<compile_context>
chip_gen: v7x
topology: tpu7x:2x2x1
jax: 0.10.0
libtpu: 0.0.40
codegen_flags: <defaults>
</compile_context>

<pallas_src>
import functools

import jax
import jax.numpy as jnp
from jax.experimental import pallas as pl
from jax.experimental.pallas import tpu as pltpu

D_IN, H1, H2, D_OUT = 784, 500, 50, 10
H1_PAD, H2_PAD, OUT_PAD = 512, 128, 128  # lane-friendly padded feature dims


def _elu(v):
    # ELU(alpha=1); clamp the exp argument so the unselected branch is finite.
    return jnp.where(v > 0.0, v, jnp.exp(jnp.minimum(v, 0.0)) - 1.0)


def _mlp_kernel(x_ref, w1_ref, b1_ref, w2_ref, b2_ref, w3_ref, b3_ref, o_ref):
    """p == 0 path: no dropout work at all."""
    cdt = w1_ref.dtype
    h1 = _elu(jnp.dot(x_ref[...], w1_ref[...],
                      preferred_element_type=jnp.float32) + b1_ref[...])
    h2 = _elu(jnp.dot(h1.astype(cdt), w2_ref[...],
                      preferred_element_type=jnp.float32) + b2_ref[...])
    h3 = _elu(jnp.dot(h2.astype(cdt), w3_ref[...],
                      preferred_element_type=jnp.float32) + b3_ref[...])
    o_ref[...] = h3.astype(o_ref.dtype)


def _mlp_dropout_kernel(x_ref, w1_ref, b1_ref, w2_ref, b2_ref, w3_ref, b3_ref,
                        bits1_ref, bits2_ref, o_ref, *, threshold, inv_keep):
    """Training path: inverted dropout via integer-threshold compare."""
    cdt = w1_ref.dtype
    thr = jnp.uint32(threshold)
    scale = jnp.float32(inv_keep)

    def dropout(v, bits):
        keep = bits >= thr              # P(keep) = 1 - p
        return jnp.where(keep, v * scale, 0.0)

    h1 = _elu(jnp.dot(x_ref[...], w1_ref[...],
                      preferred_element_type=jnp.float32) + b1_ref[...])
    h1 = dropout(h1, bits1_ref[...])
    h2 = _elu(jnp.dot(h1.astype(cdt), w2_ref[...],
                      preferred_element_type=jnp.float32) + b2_ref[...])
    h2 = dropout(h2, bits2_ref[...])
    h3 = _elu(jnp.dot(h2.astype(cdt), w3_ref[...],
                      preferred_element_type=jnp.float32) + b3_ref[...])
    o_ref[...] = h3.astype(o_ref.dtype)


def _pad2(a, rows, cols):
    return jnp.pad(a, ((0, rows - a.shape[0]), (0, cols - a.shape[1])))


def _round_up(n, m):
    return ((n + m - 1) // m) * m


@functools.partial(jax.jit, static_argnames=("p", "tile_b", "compute_dtype"))
def dropout_model_forward(x, params, seed=0, *, p=0.0, tile_b=512,
                          compute_dtype=jnp.bfloat16):
    """Forward pass of DropoutModel.  x: [batch, 784] -> logits [batch, 10]."""
    (w1, b1), (w2, b2), (w3, b3) = params
    batch = x.shape[0]

    # Batch tile: multiple of 8 sublanes; 512 rows by default (85%+ of HBM
    # roofline per tiling data, well under v7x's 64 MiB VMEM with resident
    # weights ~1 MB bf16 + double-buffered x/bits/out tiles).
    tb = min(int(tile_b), _round_up(batch, 8))
    batch_pad = _round_up(batch, tb)
    n_tiles = batch_pad // tb

    # Pad batch rows and feature dims; cast matmul operands to compute_dtype.
    xp = jnp.pad(x, ((0, batch_pad - batch), (0, 0))).astype(compute_dtype)
    w1p = _pad2(w1, D_IN, H1_PAD).astype(compute_dtype)
    b1p = _pad2(b1.reshape(1, -1), 1, H1_PAD).astype(jnp.float32)
    w2p = _pad2(w2, H1_PAD, H2_PAD).astype(compute_dtype)
    b2p = _pad2(b2.reshape(1, -1), 1, H2_PAD).astype(jnp.float32)
    w3p = _pad2(w3, H2_PAD, OUT_PAD).astype(compute_dtype)
    b3p = _pad2(b3.reshape(1, -1), 1, OUT_PAD).astype(jnp.float32)

    def row_spec(cols):
        return pl.BlockSpec((tb, cols), lambda i: (i, 0))

    def resident_spec(shape):
        return pl.BlockSpec(shape, lambda i: (0, 0))

    common_in_specs = [
        row_spec(D_IN),                                          # x
        resident_spec((D_IN, H1_PAD)), resident_spec((1, H1_PAD)),   # w1, b1
        resident_spec((H1_PAD, H2_PAD)), resident_spec((1, H2_PAD)), # w2, b2
        resident_spec((H2_PAD, OUT_PAD)), resident_spec((1, OUT_PAD)),  # w3, b3
    ]
    out_spec = pl.BlockSpec((tb, OUT_PAD), lambda i: (i, 0))
    out_shape = jax.ShapeDtypeStruct((batch_pad, OUT_PAD), jnp.float32)
    compiler_params = pltpu.CompilerParams(dimension_semantics=("parallel",))

    flops = 2 * batch_pad * (D_IN * H1_PAD + H1_PAD * H2_PAD + H2_PAD * OUT_PAD)
    transcendentals = batch_pad * (H1_PAD + H2_PAD + OUT_PAD)
    weight_bytes = sum(a.size * a.dtype.itemsize
                       for a in (w1p, b1p, w2p, b2p, w3p, b3p))

    if p <= 0.0:
        bytes_accessed = xp.size * xp.dtype.itemsize + weight_bytes \
            + batch_pad * OUT_PAD * 4
        out = pl.pallas_call(
            _mlp_kernel,
            out_shape=out_shape,
            grid=(n_tiles,),
            in_specs=common_in_specs,
            out_specs=out_spec,
            compiler_params=compiler_params,
            cost_estimate=pl.CostEstimate(flops=flops,
                                          transcendentals=transcendentals,
                                          bytes_accessed=bytes_accessed),
        )(xp, w1p, b1p, w2p, b2p, w3p, b3p)
    else:
        # Integer dropout threshold: P(bits >= threshold) = 1 - p.
        threshold = min(int(round(float(p) * (2 ** 32))), 2 ** 32 - 1)
        inv_keep = (1.0 / (1.0 - float(p))) if p < 1.0 else 0.0
        key = jax.random.PRNGKey(seed)
        k1, k2 = jax.random.split(key)
        bits1 = jax.random.bits(k1, (batch_pad, H1_PAD), dtype=jnp.uint32)
        bits2 = jax.random.bits(k2, (batch_pad, H2_PAD), dtype=jnp.uint32)
        bytes_accessed = xp.size * xp.dtype.itemsize + weight_bytes \
            + bits1.size * 4 + bits2.size * 4 + batch_pad * OUT_PAD * 4
        kernel = functools.partial(_mlp_dropout_kernel,
                                   threshold=threshold, inv_keep=inv_keep)
        out = pl.pallas_call(
            kernel,
            out_shape=out_shape,
            grid=(n_tiles,),
            in_specs=common_in_specs + [row_spec(H1_PAD), row_spec(H2_PAD)],
            out_specs=out_spec,
            compiler_params=compiler_params,
            cost_estimate=pl.CostEstimate(flops=flops,
                                          transcendentals=transcendentals,
                                          bytes_accessed=bytes_accessed),
        )(xp, w1p, b1p, w2p, b2p, w3p, b3p, bits1, bits2)

    return out[:batch, :D_OUT]


def init_params(key):
    """Deterministic init matching nn.Linear fan-in bounds for 784->500->50->10.
    Weights stored as [in, out] (transpose of PyTorch layout); biases [out]."""
    dims = [(D_IN, H1), (H1, H2), (H2, D_OUT)]
    params = []
    for fan_in, fan_out in dims:
        kw, kb, key = jax.random.split(key, 3)
        bound = 1.0 / jnp.sqrt(fan_in)
        w = jax.random.uniform(kw, (fan_in, fan_out), jnp.float32, -bound, bound)
        b = jax.random.uniform(kb, (fan_out,), jnp.float32, -bound, bound)
        params.append((w, b))
    return params


def reference_forward(x, params, compute_dtype=jnp.bfloat16):
    """Pure-JAX reference for p == 0 (dropout is identity), same cast pattern."""
    h = x
    for w, b in params:
        pre = jnp.dot(h.astype(compute_dtype), w.astype(compute_dtype),
                      preferred_element_type=jnp.float32) + b.astype(jnp.float32)
        h = jax.nn.elu(pre)
    return h


if __name__ == "__main__":
    key = jax.random.PRNGKey(0)
    kx, kp = jax.random.split(key)

    batch = 8
    x = jax.random.normal(kx, (batch, D_IN), dtype=jnp.float32)
    params = init_params(kp)

    # p = 0 (the PyTorch default): dropout is identity -> compare vs reference.
    out = jax.block_until_ready(dropout_model_forward(x, params, seed=0, p=0.0))
    ref = reference_forward(x, params, compute_dtype=jnp.bfloat16)
    assert out.shape == (batch, D_OUT)
    assert jnp.allclose(out, ref, atol=1e-2, rtol=1e-2)

    # f32 compute path: tight tolerance vs f32 reference.
    out32 = jax.block_until_ready(
        dropout_model_forward(x, params, seed=0, p=0.0,
                              compute_dtype=jnp.float32))
    ref32 = reference_forward(x, params, compute_dtype=jnp.float32)
    assert jnp.allclose(out32, ref32, atol=1e-5, rtol=1e-5)

    # Dropout path (stochastic): just check shape / finiteness.
    out_p = jax.block_until_ready(
        dropout_model_forward(x, params, seed=42, p=0.25))
    assert out_p.shape == (batch, D_OUT)
    assert bool(jnp.all(jnp.isfinite(out_p)))

    print("KERNEL_OK")
</pallas_src>

<mosaic_0001>
module attributes {stable_mosaic.version = 11 : i64} {
  func.func @_mlp_kernel(%arg0: i32, %arg1: memref<8x784xbf16, #tpu.memory_space<vmem>>, %arg2: memref<784x512xbf16, #tpu.memory_space<vmem>>, %arg3: memref<1x512xf32, #tpu.memory_space<vmem>>, %arg4: memref<512x128xbf16, #tpu.memory_space<vmem>>, %arg5: memref<1x128xf32, #tpu.memory_space<vmem>>, %arg6: memref<128x128xbf16, #tpu.memory_space<vmem>>, %arg7: memref<1x128xf32, #tpu.memory_space<vmem>>, %arg8: memref<8x128xf32, #tpu.memory_space<vmem>>) attributes {dimension_semantics = [#tpu.dimension_semantics<parallel>], iteration_bounds = array<i64: 1>, scalar_prefetch = 0 : i64, scratch_operands = 0 : i64, tpu.core_type = #tpu.core_type<tc>, window_params = [{transform_indices = @transform_0, window_bounds = array<i64: 8, 784>}, {pipeline_mode = #tpu.pipeline_mode<synchronous>, transform_indices = @transform_1, window_bounds = array<i64: 784, 512>}, {pipeline_mode = #tpu.pipeline_mode<synchronous>, transform_indices = @transform_2, window_bounds = array<i64: 1, 512>}, {pipeline_mode = #tpu.pipeline_mode<synchronous>, transform_indices = @transform_3, window_bounds = array<i64: 512, 128>}, {pipeline_mode = #tpu.pipeline_mode<synchronous>, transform_indices = @transform_4, window_bounds = array<i64: 1, 128>}, {pipeline_mode = #tpu.pipeline_mode<synchronous>, transform_indices = @transform_5, window_bounds = array<i64: 128, 128>}, {pipeline_mode = #tpu.pipeline_mode<synchronous>, transform_indices = @transform_6, window_bounds = array<i64: 1, 128>}, {transform_indices = @transform_7, window_bounds = array<i64: 8, 128>}]} {
    %c0 = arith.constant 0 : index
    %c0_0 = arith.constant 0 : index
    %0 = vector.load %arg1[%c0, %c0_0] : memref<8x784xbf16, #tpu.memory_space<vmem>>, vector<8x784xbf16>
    %c0_1 = arith.constant 0 : index
    %c0_2 = arith.constant 0 : index
    %1 = vector.load %arg2[%c0_1, %c0_2] : memref<784x512xbf16, #tpu.memory_space<vmem>>, vector<784x512xbf16>
    %cst = arith.constant dense<0.000000e+00> : vector<8x512xf32>
    %2 = tpu.matmul %0, %1, %cst {dimension_numbers = #tpu.dot_dimension_numbers<[1], [0], [0], [1], [0, 0, 1, 1], [], []>} : vector<8x784xbf16>, vector<784x512xbf16>, vector<8x512xf32> -> vector<8x512xf32>
    %c0_3 = arith.constant 0 : index
    %c0_4 = arith.constant 0 : index
    %3 = vector.load %arg3[%c0_3, %c0_4] : memref<1x512xf32, #tpu.memory_space<vmem>>, vector<1x512xf32>
    %4 = vector.broadcast %3 : vector<1x512xf32> to vector<8x512xf32>
    %5 = arith.addf %2, %4 : vector<8x512xf32>
    %cst_5 = arith.constant 0.000000e+00 : f32
    %6 = vector.broadcast %cst_5 : f32 to vector<8x512xf32>
    %7 = arith.cmpf ogt, %5, %6 : vector<8x512xf32>
    %cst_6 = arith.constant 0.000000e+00 : f32
    %8 = vector.broadcast %cst_6 : f32 to vector<8x512xf32>
    %9 = arith.minimumf %5, %8 : vector<8x512xf32>
    %10 = math.exp %9 : vector<8x512xf32>
    %cst_7 = arith.constant 1.000000e+00 : f32
    %11 = vector.broadcast %cst_7 : f32 to vector<8x512xf32>
    %12 = arith.subf %10, %11 : vector<8x512xf32>
    %13 = arith.select %7, %5, %12 : vector<8x512xi1>, vector<8x512xf32>
    %14 = arith.truncf %13 : vector<8x512xf32> to vector<8x512xbf16>
    %c0_8 = arith.constant 0 : index
    %c0_9 = arith.constant 0 : index
    %15 = vector.load %arg4[%c0_8, %c0_9] : memref<512x128xbf16, #tpu.memory_space<vmem>>, vector<512x128xbf16>
    %cst_10 = arith.constant dense<0.000000e+00> : vector<8x128xf32>
    %16 = tpu.matmul %14, %15, %cst_10 {dimension_numbers = #tpu.dot_dimension_numbers<[1], [0], [0], [1], [0, 0, 1, 1], [], []>} : vector<8x512xbf16>, vector<512x128xbf16>, vector<8x128xf32> -> vector<8x128xf32>
    %c0_11 = arith.constant 0 : index
    %c0_12 = arith.constant 0 : index
    %17 = vector.load %arg5[%c0_11, %c0_12] : memref<1x128xf32, #tpu.memory_space<vmem>>, vector<1x128xf32>
    %18 = vector.broadcast %17 : vector<1x128xf32> to vector<8x128xf32>
    %19 = arith.addf %16, %18 : vector<8x128xf32>
    %cst_13 = arith.constant 0.000000e+00 : f32
    %20 = vector.broadcast %cst_13 : f32 to vector<8x128xf32>
    %21 = arith.cmpf ogt, %19, %20 : vector<8x128xf32>
    %cst_14 = arith.constant 0.000000e+00 : f32
    %22 = vector.broadcast %cst_14 : f32 to vector<8x128xf32>
    %23 = arith.minimumf %19, %22 : vector<8x128xf32>
    %24 = math.exp %23 : vector<8x128xf32>
    %cst_15 = arith.constant 1.000000e+00 : f32
    %25 = vector.broadcast %cst_15 : f32 to vector<8x128xf32>
    %26 = arith.subf %24, %25 : vector<8x128xf32>
    %27 = arith.select %21, %19, %26 : vector<8x128xi1>, vector<8x128xf32>
    %28 = arith.truncf %27 : vector<8x128xf32> to vector<8x128xbf16>
    %c0_16 = arith.constant 0 : index
    %c0_17 = arith.constant 0 : index
    %29 = vector.load %arg6[%c0_16, %c0_17] : memref<128x128xbf16, #tpu.memory_space<vmem>>, vector<128x128xbf16>
    %cst_18 = arith.constant dense<0.000000e+00> : vector<8x128xf32>
    %30 = tpu.matmul %28, %29, %cst_18 {dimension_numbers = #tpu.dot_dimension_numbers<[1], [0], [0], [1], [0, 0, 1, 1], [], []>} : vector<8x128xbf16>, vector<128x128xbf16>, vector<8x128xf32> -> vector<8x128xf32>
    %c0_19 = arith.constant 0 : index
    %c0_20 = arith.constant 0 : index
    %31 = vector.load %arg7[%c0_19, %c0_20] : memref<1x128xf32, #tpu.memory_space<vmem>>, vector<1x128xf32>
    %32 = vector.broadcast %31 : vector<1x128xf32> to vector<8x128xf32>
    %33 = arith.addf %30, %32 : vector<8x128xf32>
    %cst_21 = arith.constant 0.000000e+00 : f32
    %34 = vector.broadcast %cst_21 : f32 to vector<8x128xf32>
    %35 = arith.cmpf ogt, %33, %34 : vector<8x128xf32>
    %cst_22 = arith.constant 0.000000e+00 : f32
    %36 = vector.broadcast %cst_22 : f32 to vector<8x128xf32>
    %37 = arith.minimumf %33, %36 : vector<8x128xf32>
    %38 = math.exp %37 : vector<8x128xf32>
    %cst_23 = arith.constant 1.000000e+00 : f32
    %39 = vector.broadcast %cst_23 : f32 to vector<8x128xf32>
    %40 = arith.subf %38, %39 : vector<8x128xf32>
    %41 = arith.select %35, %33, %40 : vector<8x128xi1>, vector<8x128xf32>
    %c0_24 = arith.constant 0 : index
    %c0_25 = arith.constant 0 : index
    %42 = vector.load %arg8[%c0_24, %c0_25] : memref<8x128xf32, #tpu.memory_space<vmem>>, vector<8x128xf32>
    tpu.vector_store %arg8[%c0_24, %c0_25], %41 {strides = array<i32>} : memref<8x128xf32, #tpu.memory_space<vmem>>, vector<8x128xf32>,
    return
  }
  func.func @transform_0(%arg0: i32) -> (i32, i32) {
    %c0_i32 = arith.constant 0 : i32
    %c0_i32_0 = arith.constant 0 : i32
    return %arg0, %c0_i32 : i32, i32
  }
  func.func @transform_1(%arg0: i32) -> (i32, i32) {
    %c0_i32 = arith.constant 0 : i32
    %c0_i32_0 = arith.constant 0 : i32
    %c0_i32_1 = arith.constant 0 : i32
    return %c0_i32, %c0_i32_0 : i32, i32
  }
  func.func @transform_2(%arg0: i32) -> (i32, i32) {
    %c0_i32 = arith.constant 0 : i32
    %c0_i32_0 = arith.constant 0 : i32
    %c0_i32_1 = arith.constant 0 : i32
    return %c0_i32, %c0_i32_0 : i32, i32
  }
  func.func @transform_3(%arg0: i32) -> (i32, i32) {
    %c0_i32 = arith.constant 0 : i32
    %c0_i32_0 = arith.constant 0 : i32
    %c0_i32_1 = arith.constant 0 : i32
    return %c0_i32, %c0_i32_0 : i32, i32
  }
  func.func @transform_4(%arg0: i32) -> (i32, i32) {
    %c0_i32 = arith.constant 0 : i32
    %c0_i32_0 = arith.constant 0 : i32
    %c0_i32_1 = arith.constant 0 : i32
    return %c0_i32, %c0_i32_0 : i32, i32
  }
  func.func @transform_5(%arg0: i32) -> (i32, i32) {
    %c0_i32 = arith.constant 0 : i32
    %c0_i32_0 = arith.constant 0 : i32
    %c0_i32_1 = arith.constant 0 : i32
    return %c0_i32, %c0_i32_0 : i32, i32
  }
  func.func @transform_6(%arg0: i32) -> (i32, i32) {
    %c0_i32 = arith.constant 0 : i32
    %c0_i32_0 = arith.constant 0 : i32
    %c0_i32_1 = arith.constant 0 : i32
    return %c0_i32, %c0_i32_0 : i32, i32
  }
  func.func @transform_7(%arg0: i32) -> (i32, i32) {
    %c0_i32 = arith.constant 0 : i32
    %c0_i32_0 = arith.constant 0 : i32
    return %arg0, %c0_i32 : i32, i32
  }
}

</mosaic_0001>

<bundles_post_ra>
// kernel: dropout_model_forward.1
= control target key start
LH: loop header
LB: loop body
LE: loop exit
PB: predicated region body
PF: predicated region fallthrough
CT: control target
= control target key end

     0   :  { %v2830_v2 = vmov 0   ;;  %vm1254_vm0 = vcmask 130048   ;;  %s3640_s0 = inlined_call_operand.vmem [shape: bf16[8,784], index: 0, kind: input, shape index: {}]   ;;  %s3641_s1 = inlined_call_operand.vmem [shape: bf16[784,512], index: 1, kind: input, shape index: {}]   ;;  %s3642_s2 = inlined_call_operand.vmem [shape: f32[1,512], index: 2, kind: input, shape index: {}]   ;;  %s3643_s3 = inlined_call_operand.vmem [shape: bf16[512,128], index: 3, kind: input, shape index: {}]   ;;  %s3644_s4 = inlined_call_operand.vmem [shape: f32[1,128], index: 4, kind: input, shape index: {}]   ;;  %s3645_s5 = inlined_call_operand.vmem [shape: bf16[128,128], index: 5, kind: input, shape index: {}]   ;;  %s3646_s6 = inlined_call_operand.vmem [shape: f32[1,128], index: 6, kind: input, shape index: {}]   ;;  %s3647_s7 = inlined_call_operand.hbm [shape: f32[8,128], index: 7, kind: output, shape index: {}]  }
   0x1   :  { %v2452_v0 = vld [vmem:[%s3641_s1 + $0x4] ss:$16 sps:$4 sm:$0xff]   ;;  %1413 = vmatprep.mubr.bf16.mxu1 %v2830_v2  ;;  %v2456_v3 = vld [vmem:[%s3641_s1] ss:$16 sps:$4 sm:$0xff]   ;;  %v2460_v6 = vld [vmem:[%s3640_s0 + $0x18] ss:$0 sps:$4 sm:$0xff]  }
   0x2   :  { %v2454_v1 = vld [vmem:[%s3641_s1 + $0x604] ss:$16 sps:$4 sm:$0xff]   ;;  %1258 = vmatprep.subr.bf16.mxu0 %v2452_v0  ;;  %v2457_v4 = vld [vmem:[%s3641_s1 + $0x600] ss:$16 sps:$4 sm:$0xff]   ;;  %v2461_v7 = vld [vmem:[%s3641_s1 + $0x8] ss:$16 sps:$4 sm:$0xff]  }
   0x3   :  { %1381 = vmatprep.subr.bf16.mxu1 %v2454_v1  ;;  %v2458_v5 = vld [vmem:[%s3641_s1 + $0x24] ss:$16 sps:$4 sm:$0xff]   ;;  %1259 = vmatpush1.bf16.msra.mxu0 %v2456_v3  ;;  %v2463_v8 = vld [vmem:[%s3641_s1 + $0xc] ss:$16 sps:$4 sm:$0xff]   ;;  %v2464_v9 = vld [vmem:[%s3641_s1 + $0x20] ss:$16 sps:$4 sm:$0xff]  }
   0x4   :  { %1382 = vmatpush1.bf16.msra.mxu1 %v2457_v4  ;;  %1260 = vmatprep.subr.bf16.mxu0 %v2458_v5  ;;  %v2465_v10 = vld [vmem:[%s3641_s1 + $0x44] ss:$16 sps:$4 sm:$0xff]   ;;  %v2467_v11 = vld [vmem:[%s3641_s1 + $0x28] ss:$16 sps:$4 sm:$0xff]   ;;  %v2469_v12 = vld [vmem:[%s3641_s1 + $0x2c] ss:$16 sps:$4 sm:$0xff]  }
   0x5   :  { %1422 = vmatprep.subr.bf16.mxu1 %v2463_v8  ;;  %v2470_v13 = vld [vmem:[%s3641_s1 + $0x40] ss:$16 sps:$4 sm:$0xff]   ;;  %v2471_v14 = vld [vmem:[%s3641_s1 + $0x64] ss:$16 sps:$4 sm:$0xff]   ;;  %v2475_v15 = vld [vmem:[%s3641_s1 + $0x4c] ss:$16 sps:$4 sm:$0xff]  }
   0x6   :  { %v2473_v16 = vld [vmem:[%s3641_s1 + $0x48] ss:$16 sps:$4 sm:$0xff]   ;;  %v2476_v17 = vld [vmem:[%s3641_s1 + $0x60] ss:$16 sps:$4 sm:$0xff]   ;;  %v2477_v18 = vld [vmem:[%s3641_s1 + $0x84] ss:$16 sps:$4 sm:$0xff]  }
   0x7   :  { %2299 = vmatmul.mubr.msk.bf16.vlgmr.msra.gmra.mrb[0].mxu1 %vm1254_vm0, %v2460_v6  ;;  %1261 = vmatpush1.bf16.msra.mxu0 %v2464_v9  ;;  %v2481_v19 = vld [vmem:[%s3641_s1 + $0x6c] ss:$16 sps:$4 sm:$0xff]   ;;  %v2479_v20 = vld [vmem:[%s3641_s1 + $0x68] ss:$16 sps:$4 sm:$0xff]   ;;  %v2482_v21 = vld [vmem:[%s3641_s1 + $0x80] ss:$16 sps:$4 sm:$0xff]  }
   0x8   :  { %1423 = vmatpush1.bf16.msra.mxu1 %v2461_v7  ;;  %1262 = vmatprep.subr.bf16.mxu0 %v2465_v10  ;;  %v2483_v22 = vld [vmem:[%s3641_s1 + $0xa4] ss:$16 sps:$4 sm:$0xff]   ;;  %v2487_v23 = vld [vmem:[%s3641_s1 + $0x8c] ss:$16 sps:$4 sm:$0xff]   ;;  %v2485_v24 = vld [vmem:[%s3641_s1 + $0x88] ss:$16 sps:$4 sm:$0xff]  }
   0x9   :  { %1424 = vmatprep.subr.bf16.mxu1 %v2469_v12  ;;  %v2488_v25 = vld [vmem:[%s3641_s1 + $0xa0] ss:$16 sps:$4 sm:$0xff]   ;;  %v2489_v26 = vld [vmem:[%s3641_s1 + $0xc4] ss:$16 sps:$4 sm:$0xff]   ;;  %v2493_v27 = vld [vmem:[%s3641_s1 + $0xac] ss:$16 sps:$4 sm:$0xff]  }
   0xa   :  { %v2491_v28 = vld [vmem:[%s3641_s1 + $0xa8] ss:$16 sps:$4 sm:$0xff]   ;;  %v2494_v29 = vld [vmem:[%s3641_s1 + $0xc0] ss:$16 sps:$4 sm:$0xff]   ;;  %v2495_v30 = vld [vmem:[%s3641_s1 + $0xe4] ss:$16 sps:$4 sm:$0xff]  }
   0xb   :  { %1263 = vmatpush1.bf16.msra.mxu0 %v2470_v13  ;;  %v2499_v31 = vld [vmem:[%s3641_s1 + $0xcc] ss:$16 sps:$4 sm:$0xff]   ;;  %v2497_v32 = vld [vmem:[%s3641_s1 + $0xc8] ss:$16 sps:$4 sm:$0xff]   ;;  %v2500_v33 = vld [vmem:[%s3641_s1 + $0xe0] ss:$16 sps:$4 sm:$0xff]  }
   0xc   :  { %1425 = vmatpush1.bf16.msra.mxu1 %v2467_v11  ;;  %1264 = vmatprep.subr.bf16.mxu0 %v2471_v14  ;;  %v2501_v34 = vld [vmem:[%s3641_s1 + $0x104] ss:$16 sps:$4 sm:$0xff]   ;;  %v2505_v35 = vld [vmem:[%s3641_s1 + $0xec] ss:$16 sps:$4 sm:$0xff]   ;;  %v2503_v36 = vld [vmem:[%s3641_s1 + $0xe8] ss:$16 sps:$4 sm:$0xff]  }
   0xd   :  { %1426 = vmatprep.subr.bf16.mxu1 %v2475_v15  ;;  %v2506_v37 = vld [vmem:[%s3641_s1 + $0x100] ss:$16 sps:$4 sm:$0xff]   ;;  %v2507_v38 = vld [vmem:[%s3641_s1 + $0x124] ss:$16 sps:$4 sm:$0xff]   ;;  %v2511_v39 = vld [vmem:[%s3641_s1 + $0x10c] ss:$16 sps:$4 sm:$0xff]  }
   0xe   :  { %v2509_v40 = vld [vmem:[%s3641_s1 + $0x108] ss:$16 sps:$4 sm:$0xff]   ;;  %v2512_v41 = vld [vmem:[%s3641_s1 + $0x120] ss:$16 sps:$4 sm:$0xff]   ;;  %v2513_v42 = vld [vmem:[%s3641_s1 + $0x144] ss:$16 sps:$4 sm:$0xff]  }
   0xf   :  { %1265 = vmatpush1.bf16.msra.mxu0 %v2476_v17  ;;  %v2517_v43 = vld [vmem:[%s3641_s1 + $0x12c] ss:$16 sps:$4 sm:$0xff]   ;;  %v2515_v44 = vld [vmem:[%s3641_s1 + $0x128] ss:$16 sps:$4 sm:$0xff]   ;;  %v2518_v45 = vld [vmem:[%s3641_s1 + $0x140] ss:$16 sps:$4 sm:$0xff]  }
  0x10   :  { %1427 = vmatpush1.bf16.msra.mxu1 %v2473_v16  ;;  %1266 = vmatprep.subr.bf16.mxu0 %v2477_v18  ;;  %v2519_v46 = vld [vmem:[%s3641_s1 + $0x164] ss:$16 sps:$4 sm:$0xff]   ;;  %v2523_v47 = vld [vmem:[%s3641_s1 + $0x14c] ss:$16 sps:$4 sm:$0xff]   ;;  %v2521_v48 = vld [vmem:[%s3641_s1 + $0x148] ss:$16 sps:$4 sm:$0xff]  }
  0x11   :  { %1428 = vmatprep.subr.bf16.mxu1 %v2481_v19  ;;  %v28_v49 = vld [vmem:[%s3640_s0] sm:$0xff]  ;;  %v2529_v53 = vld [vmem:[%s3641_s1 + $0x16c] ss:$16 sps:$4 sm:$0xff]   ;;  %v2527_v54 = vld [vmem:[%s3641_s1 + $0x168] ss:$16 sps:$4 sm:$0xff]  }
  0x12   :  { %v2524_v50 = vld [vmem:[%s3641_s1 + $0x160] ss:$16 sps:$4 sm:$0xff]   ;;  %v2525_v51 = vld [vmem:[%s3641_s1 + $0x184] ss:$16 sps:$4 sm:$0xff]   ;;  %v2097_v52 = vcombine.high %v28_v49, %v28_v49  ;;  %v2535_v57 = vld [vmem:[%s3641_s1 + $0x18c] ss:$16 sps:$4 sm:$0xff]   ;;  %v2096_v7 = vcombine.low %v28_v49, %v28_v49 }
  0x13   :  { %1267 = vmatpush1.bf16.msra.mxu0 %v2482_v21  ;;  %v2530_v55 = vld [vmem:[%s3641_s1 + $0x180] ss:$16 sps:$4 sm:$0xff]   ;;  %v2531_v56 = vld [vmem:[%s3641_s1 + $0x1a4] ss:$16 sps:$4 sm:$0xff]   ;;  %v2533_v58 = vld [vmem:[%s3641_s1 + $0x188] ss:$16 sps:$4 sm:$0xff]  }
  0x14   :  { %1429 = vmatpush1.bf16.msra.mxu1 %v2479_v20  ;;  %1268 = vmatprep.subr.bf16.mxu0 %v2483_v22  ;;  %v2536_v59 = vld [vmem:[%s3641_s1 + $0x1a0] ss:$16 sps:$4 sm:$0xff]   ;;  %v2537_v60 = vld [vmem:[%s3641_s1 + $0x1c4] ss:$16 sps:$4 sm:$0xff]   ;;  %v2541_v61 = vld [vmem:[%s3641_s1 + $0x1ac] ss:$16 sps:$4 sm:$0xff]  }
  0x15   :  { %1430 = vmatprep.subr.bf16.mxu1 %v2487_v23  ;;  %1290 = vmatprep.mubr.bf16.mxu0 %v2097_v52  ;;  %v2539_v62 = vld [vmem:[%s3641_s1 + $0x1a8] ss:$16 sps:$4 sm:$0xff]   ;;  %v2542_v63 = vld [vmem:[%s3641_s1 + $0x1c0] ss:$16 sps:$4 sm:$0xff]   ;;  %v2543_v0 = vld [vmem:[%s3641_s1 + $0x1e4] ss:$16 sps:$4 sm:$0xff]  }
  0x16   :  { %1454 = vmatprep.mubr.bf16.mxu1 %v2097_v52  ;;  %v2547_v1 = vld [vmem:[%s3641_s1 + $0x1cc] ss:$16 sps:$4 sm:$0xff]   ;;  %v2545_v3 = vld [vmem:[%s3641_s1 + $0x1c8] ss:$16 sps:$4 sm:$0xff]   ;;  %v2548_v4 = vld [vmem:[%s3641_s1 + $0x1e0] ss:$16 sps:$4 sm:$0xff]  }
  0x17   :  { %1269 = vmatpush1.bf16.msra.mxu0 %v2488_v25  ;;  %v2553_v5 = vld [vmem:[%s3641_s1 + $0x204] ss:$16 sps:$4 sm:$0xff]   ;;  %v2556_v6 = vld [vmem:[%s3641_s1 + $0x1ec] ss:$16 sps:$4 sm:$0xff]   ;;  %v2551_v8 = vld [vmem:[%s3641_s1 + $0x200] ss:$16 sps:$4 sm:$0xff]  }
  0x18   :  { %1431 = vmatpush1.bf16.msra.mxu1 %v2485_v24  ;;  %1270 = vmatprep.subr.bf16.mxu0 %v2489_v26  ;;  %v2554_v9 = vld [vmem:[%s3641_s1 + $0x1e8] ss:$16 sps:$4 sm:$0xff]   ;;  %v2559_v10 = vld [vmem:[%s3641_s1 + $0x224] ss:$16 sps:$4 sm:$0xff]   ;;  %v2562_v11 = vld [vmem:[%s3641_s1 + $0x20c] ss:$16 sps:$4 sm:$0xff]  }
  0x19   :  { %1432 = vmatprep.subr.bf16.mxu1 %v2493_v27  ;;  %v2557_v12 = vld [vmem:[%s3641_s1 + $0x220] ss:$16 sps:$4 sm:$0xff]   ;;  %v2560_v13 = vld [vmem:[%s3641_s1 + $0x208] ss:$16 sps:$4 sm:$0xff]   ;;  %v2565_v14 = vld [vmem:[%s3641_s1 + $0x244] ss:$16 sps:$4 sm:$0xff]  }
  0x1a   :  { %v2568_v15 = vld [vmem:[%s3641_s1 + $0x22c] ss:$16 sps:$4 sm:$0xff]   ;;  %v2563_v16 = vld [vmem:[%s3641_s1 + $0x240] ss:$16 sps:$4 sm:$0xff]   ;;  %v2566_v17 = vld [vmem:[%s3641_s1 + $0x228] ss:$16 sps:$4 sm:$0xff]  }
  0x1b   :  { %1271 = vmatpush1.bf16.msra.mxu0 %v2494_v29  ;;  %v2571_v18 = vld [vmem:[%s3641_s1 + $0x264] ss:$16 sps:$4 sm:$0xff]   ;;  %v2574_v19 = vld [vmem:[%s3641_s1 + $0x24c] ss:$16 sps:$4 sm:$0xff]   ;;  %v2569_v20 = vld [vmem:[%s3641_s1 + $0x260] ss:$16 sps:$4 sm:$0xff]  }
  0x1c   :  { %1433 = vmatpush1.bf16.msra.mxu1 %v2491_v28  ;;  %1272 = vmatprep.subr.bf16.mxu0 %v2495_v30  ;;  %v2572_v21 = vld [vmem:[%s3641_s1 + $0x248] ss:$16 sps:$4 sm:$0xff]   ;;  %v2577_v22 = vld [vmem:[%s3641_s1 + $0x284] ss:$16 sps:$4 sm:$0xff]   ;;  %v2580_v23 = vld [vmem:[%s3641_s1 + $0x26c] ss:$16 sps:$4 sm:$0xff]  }
  0x1d   :  { %1434 = vmatprep.subr.bf16.mxu1 %v2499_v31  ;;  %v2575_v24 = vld [vmem:[%s3641_s1 + $0x280] ss:$16 sps:$4 sm:$0xff]   ;;  %v2578_v25 = vld [vmem:[%s3641_s1 + $0x268] ss:$16 sps:$4 sm:$0xff]   ;;  %v2583_v26 = vld [vmem:[%s3641_s1 + $0x2a4] ss:$16 sps:$4 sm:$0xff]  }
  0x1e   :  { %v2586_v27 = vld [vmem:[%s3641_s1 + $0x28c] ss:$16 sps:$4 sm:$0xff]   ;;  %v2581_v28 = vld [vmem:[%s3641_s1 + $0x2a0] ss:$16 sps:$4 sm:$0xff]   ;;  %v2584_v29 = vld [vmem:[%s3641_s1 + $0x288] ss:$16 sps:$4 sm:$0xff]  }
  0x1f   :  { %1273 = vmatpush1.bf16.msra.mxu0 %v2500_v33  ;;  %v2589_v30 = vld [vmem:[%s3641_s1 + $0x2c4] ss:$16 sps:$4 sm:$0xff]   ;;  %v2592_v31 = vld [vmem:[%s3641_s1 + $0x2ac] ss:$16 sps:$4 sm:$0xff]   ;;  %v2587_v33 = vld [vmem:[%s3641_s1 + $0x2c0] ss:$16 sps:$4 sm:$0xff]  }
  0x20   :  { %1435 = vmatpush1.bf16.msra.mxu1 %v2497_v32  ;;  %1274 = vmatprep.subr.bf16.mxu0 %v2501_v34  ;;  %v3155_v32 = vld [vmem:[%s3640_s0 + $0x8] sm:$0xff]  ;;  %v2619_v52 = vld [vmem:[%s3641_s1 + $0x364] ss:$16 sps:$4 sm:$0xff]  }
  0x21   :  { %1436 = vmatprep.subr.bf16.mxu1 %v2505_v35  ;;  %v2590_v34 = vld [vmem:[%s3641_s1 + $0x2a8] ss:$16 sps:$4 sm:$0xff]   ;;  %v2099_v35 = vcombine.high %v3155_v32, %v3155_v32  ;;  %v2616_v49 = vld [vmem:[%s3641_s1 + $0x32c] ss:$16 sps:$4 sm:$0xff]  }
  0x23   :  { %1275 = vmatpush1.bf16.msra.mxu0 %v2506_v37  ;;  %v2598_v37 = vld [vmem:[%s3641_s1 + $0x2cc] ss:$16 sps:$4 sm:$0xff]  }
  0x24   :  { %1437 = vmatpush1.bf16.msra.mxu1 %v2503_v36  ;;  %1276 = vmatprep.subr.bf16.mxu0 %v2507_v38  ;;  %v2595_v36 = vld [vmem:[%s3641_s1 + $0x2e4] ss:$16 sps:$4 sm:$0xff]   ;;  %v2593_v38 = vld [vmem:[%s3641_s1 + $0x2e0] ss:$16 sps:$4 sm:$0xff]  }
  0x25   :  { %1438 = vmatprep.subr.bf16.mxu1 %v2511_v39  ;;  %v2596_v39 = vld [vmem:[%s3641_s1 + $0x2c8] ss:$16 sps:$4 sm:$0xff]  }
  0x27   :  { %1277 = vmatpush1.bf16.msra.mxu0 %v2512_v41  ;;  %v2604_v41 = vld [vmem:[%s3641_s1 + $0x2ec] ss:$16 sps:$4 sm:$0xff]  }
  0x28   :  { %1439 = vmatpush1.bf16.msra.mxu1 %v2509_v40  ;;  %1278 = vmatprep.subr.bf16.mxu0 %v2513_v42  ;;  %v2601_v40 = vld [vmem:[%s3641_s1 + $0x304] ss:$16 sps:$4 sm:$0xff]   ;;  %v2599_v42 = vld [vmem:[%s3641_s1 + $0x300] ss:$16 sps:$4 sm:$0xff]  }
  0x29   :  { %1440 = vmatprep.subr.bf16.mxu1 %v2517_v43  ;;  %v2602_v43 = vld [vmem:[%s3641_s1 + $0x2e8] ss:$16 sps:$4 sm:$0xff]  }
  0x2b   :  { %1279 = vmatpush1.bf16.msra.mxu0 %v2518_v45  ;;  %v2610_v45 = vld [vmem:[%s3641_s1 + $0x30c] ss:$16 sps:$4 sm:$0xff]  }
  0x2c   :  { %1441 = vmatpush1.bf16.msra.mxu1 %v2515_v44  ;;  %1280 = vmatprep.subr.bf16.mxu0 %v2519_v46  ;;  %v2607_v44 = vld [vmem:[%s3641_s1 + $0x324] ss:$16 sps:$4 sm:$0xff]   ;;  %v2605_v46 = vld [vmem:[%s3641_s1 + $0x320] ss:$16 sps:$4 sm:$0xff]  }
  0x2d   :  { %1442 = vmatprep.subr.bf16.mxu1 %v2523_v47  ;;  %v2608_v47 = vld [vmem:[%s3641_s1 + $0x308] ss:$16 sps:$4 sm:$0xff]  }
  0x2f   :  { %1281 = vmatpush1.bf16.msra.mxu0 %v2524_v50  ;;  %v2611_v50 = vld [vmem:[%s3641_s1 + $0x340] ss:$16 sps:$4 sm:$0xff]  }
  0x30   :  { %1443 = vmatpush1.bf16.msra.mxu1 %v2521_v48  ;;  %1282 = vmatprep.subr.bf16.mxu0 %v2525_v51  ;;  %v2613_v48 = vld [vmem:[%s3641_s1 + $0x344] ss:$16 sps:$4 sm:$0xff]   ;;  %v2614_v51 = vld [vmem:[%s3641_s1 + $0x328] ss:$16 sps:$4 sm:$0xff]  }
  0x31   :  { %1444 = vmatprep.subr.bf16.mxu1 %v2529_v53  ;;  %v2622_v53 = vld [vmem:[%s3641_s1 + $0x34c] ss:$16 sps:$4 sm:$0xff]  }
  0x33   :  { %1283 = vmatpush1.bf16.msra.mxu0 %v2530_v55  ;;  %v2620_v55 = vld [vmem:[%s3641_s1 + $0x348] ss:$16 sps:$4 sm:$0xff]  }
  0x34   :  { %1445 = vmatpush1.bf16.msra.mxu1 %v2527_v54  ;;  %1284 = vmatprep.subr.bf16.mxu0 %v2531_v56  ;;  %v2617_v54 = vld [vmem:[%s3641_s1 + $0x360] ss:$16 sps:$4 sm:$0xff]   ;;  %v2625_v56 = vld [vmem:[%s3641_s1 + $0x384] ss:$16 sps:$4 sm:$0xff]  }
  0x35   :  { %1446 = vmatprep.subr.bf16.mxu1 %v2535_v57  ;;  %v2628_v57 = vld [vmem:[%s3641_s1 + $0x36c] ss:$16 sps:$4 sm:$0xff]  }
  0x37   :  { %1285 = vmatpush1.bf16.msra.mxu0 %v2536_v59  ;;  %v2626_v59 = vld [vmem:[%s3641_s1 + $0x368] ss:$16 sps:$4 sm:$0xff]  }
  0x38   :  { %1447 = vmatpush1.bf16.msra.mxu1 %v2533_v58  ;;  %1286 = vmatprep.subr.bf16.mxu0 %v2537_v60  ;;  %v2623_v58 = vld [vmem:[%s3641_s1 + $0x380] ss:$16 sps:$4 sm:$0xff]   ;;  %v2631_v60 = vld [vmem:[%s3641_s1 + $0x3a4] ss:$16 sps:$4 sm:$0xff]  }
  0x39   :  { %1448 = vmatprep.subr.bf16.mxu1 %v2541_v61  ;;  %v2634_v61 = vld [vmem:[%s3641_s1 + $0x38c] ss:$16 sps:$4 sm:$0xff]  }
  0x3b   :  { %1287 = vmatpush1.bf16.msra.mxu0 %v2542_v63  ;;  %v2632_v63 = vld [vmem:[%s3641_s1 + $0x388] ss:$16 sps:$4 sm:$0xff]  }
  0x3c   :  { %1449 = vmatpush1.bf16.msra.mxu1 %v2539_v62  ;;  %1288 = vmatprep.subr.bf16.mxu0 %v2543_v0  ;;  %v2629_v62 = vld [vmem:[%s3641_s1 + $0x3a0] ss:$16 sps:$4 sm:$0xff]   ;;  %v2637_v0 = vld [vmem:[%s3641_s1 + $0x3c4] ss:$16 sps:$4 sm:$0xff]  }
  0x3d   :  { %1450 = vmatprep.subr.bf16.mxu1 %v2547_v1  ;;  %v2640_v1 = vld [vmem:[%s3641_s1 + $0x3ac] ss:$16 sps:$4 sm:$0xff]  }
  0x3f   :  { %1289 = vmatpush1.bf16.msra.mxu0 %v2548_v4  ;;  %v2638_v4 = vld [vmem:[%s3641_s1 + $0x3a8] ss:$16 sps:$4 sm:$0xff]  }
  0x40   :  { %1451 = vmatpush1.bf16.msra.mxu1 %v2545_v3  ;;  %1299 = vmatprep.subr.bf16.mxu0 %v2553_v5  ;;  %v2635_v3 = vld [vmem:[%s3641_s1 + $0x3c0] ss:$16 sps:$4 sm:$0xff]   ;;  %v2643_v5 = vld [vmem:[%s3641_s1 + $0x3e4] ss:$16 sps:$4 sm:$0xff]  }
  0x41   :  { %1452 = vmatprep.subr.bf16.mxu1 %v2556_v6  ;;  %v2646_v6 = vld [vmem:[%s3641_s1 + $0x3cc] ss:$16 sps:$4 sm:$0xff]  }
  0x42   :  { %1291 = vmatmul.mubr.bf16.vlgmr.msra.gmra.mrb[0].mxu0 %v2096_v7 }
  0x43   :  { %1300 = vmatpush1.bf16.msra.mxu0 %v2551_v8  ;;  %1331 = vmatprep.mubr.bf16.mxu0 %v2099_v35  ;;  %v2644_v8 = vld [vmem:[%s3641_s1 + $0x3c8] ss:$16 sps:$4 sm:$0xff]  }
  0x44   :  { %1453 = vmatpush1.bf16.msra.mxu1 %v2554_v9  ;;  %1301 = vmatprep.subr.bf16.mxu0 %v2559_v10  ;;  %v2651_v9 = vld [vmem:[%s3641_s1 + $0x404] ss:$16 sps:$4 sm:$0xff]   ;;  %v2654_v10 = vld [vmem:[%s3641_s1 + $0x3ec] ss:$16 sps:$4 sm:$0xff]  }
  0x45   :  { %1463 = vmatprep.subr.bf16.mxu1 %v2562_v11  ;;  %v2098_v11 = vcombine.low %v3155_v32, %v3155_v32  ;;  %v2681_v32 = vld [vmem:[%s3641_s1 + $0x4a4] ss:$16 sps:$4 sm:$0xff]  }
  0x47   :  { %1455 = vmatmul.mubr.bf16.vlgmr.msra.gmra.mrb[4].mxu1 %v2096_v7  ;;  %1302 = vmatpush1.bf16.msra.mxu0 %v2557_v12  ;;  %v2641_v7 = vld [vmem:[%s3641_s1 + $0x3e0] ss:$16 sps:$4 sm:$0xff]  }
  0x48   :  { %1464 = vmatpush1.bf16.msra.mxu1 %v2560_v13  ;;  %1303 = vmatprep.subr.bf16.mxu0 %v2565_v14  ;;  %v2649_v12 = vld [vmem:[%s3641_s1 + $0x400] ss:$16 sps:$4 sm:$0xff]   ;;  %v2652_v13 = vld [vmem:[%s3641_s1 + $0x3e8] ss:$16 sps:$4 sm:$0xff]   ;;  %v2657_v14 = vld [vmem:[%s3641_s1 + $0x424] ss:$16 sps:$4 sm:$0xff]  }
  0x49   :  { %1465 = vmatprep.subr.bf16.mxu1 %v2568_v15  ;;  %1495 = vmatprep.mubr.bf16.mxu1 %v2099_v35  ;;  %v2660_v15 = vld [vmem:[%s3641_s1 + $0x40c] ss:$16 sps:$4 sm:$0xff]   ;;  %v2682_v35 = vld [vmem:[%s3641_s1 + $0x488] ss:$16 sps:$4 sm:$0xff]  }
  0x4b   :  { %1304 = vmatpush1.bf16.msra.mxu0 %v2563_v16  ;;  %v3296_v16 = vld [vmem:[%s3640_s0 + $0x10] sm:$0xff] }
  0x4c   :  { %1466 = vmatpush1.bf16.msra.mxu1 %v2566_v17  ;;  %1305 = vmatprep.subr.bf16.mxu0 %v2571_v18  ;;  %v2655_v17 = vld [vmem:[%s3641_s1 + $0x420] ss:$16 sps:$4 sm:$0xff]   ;;  %v2101_v18 = vcombine.high %v3296_v16, %v3296_v16 }
  0x4d   :  { %1467 = vmatprep.subr.bf16.mxu1 %v2574_v19  ;;  %v2658_v19 = vld [vmem:[%s3641_s1 + $0x408] ss:$16 sps:$4 sm:$0xff]  }
  0x4f   :  { %1306 = vmatpush1.bf16.msra.mxu0 %v2569_v20  ;;  %v2663_v20 = vld [vmem:[%s3641_s1 + $0x444] ss:$16 sps:$4 sm:$0xff]  }
  0x50   :  { %1468 = vmatpush1.bf16.msra.mxu1 %v2572_v21  ;;  %1307 = vmatprep.subr.bf16.mxu0 %v2577_v22  ;;  %v2666_v21 = vld [vmem:[%s3641_s1 + $0x42c] ss:$16 sps:$4 sm:$0xff]   ;;  %v2661_v22 = vld [vmem:[%s3641_s1 + $0x440] ss:$16 sps:$4 sm:$0xff]  }
  0x51   :  { %1469 = vmatprep.subr.bf16.mxu1 %v2580_v23  ;;  %v2664_v23 = vld [vmem:[%s3641_s1 + $0x428] ss:$16 sps:$4 sm:$0xff]  }
  0x53   :  { %1308 = vmatpush1.bf16.msra.mxu0 %v2575_v24  ;;  %v2669_v24 = vld [vmem:[%s3641_s1 + $0x464] ss:$16 sps:$4 sm:$0xff]  }
  0x54   :  { %1470 = vmatpush1.bf16.msra.mxu1 %v2578_v25  ;;  %1309 = vmatprep.subr.bf16.mxu0 %v2583_v26  ;;  %v2672_v25 = vld [vmem:[%s3641_s1 + $0x44c] ss:$16 sps:$4 sm:$0xff]   ;;  %v2667_v26 = vld [vmem:[%s3641_s1 + $0x460] ss:$16 sps:$4 sm:$0xff]  }
  0x55   :  { %1471 = vmatprep.subr.bf16.mxu1 %v2586_v27  ;;  %v2670_v27 = vld [vmem:[%s3641_s1 + $0x448] ss:$16 sps:$4 sm:$0xff]  }
  0x57   :  { %1310 = vmatpush1.bf16.msra.mxu0 %v2581_v28  ;;  %v2675_v28 = vld [vmem:[%s3641_s1 + $0x484] ss:$16 sps:$4 sm:$0xff]  }
  0x58   :  { %1472 = vmatpush1.bf16.msra.mxu1 %v2584_v29  ;;  %1311 = vmatprep.subr.bf16.mxu0 %v2589_v30  ;;  %v2678_v29 = vld [vmem:[%s3641_s1 + $0x46c] ss:$16 sps:$4 sm:$0xff]   ;;  %v2673_v30 = vld [vmem:[%s3641_s1 + $0x480] ss:$16 sps:$4 sm:$0xff]  }
  0x59   :  { %1473 = vmatprep.subr.bf16.mxu1 %v2592_v31  ;;  %v2676_v31 = vld [vmem:[%s3641_s1 + $0x468] ss:$16 sps:$4 sm:$0xff]  }
  0x5b   :  { %1312 = vmatpush1.bf16.msra.mxu0 %v2587_v33  ;;  %v2684_v33 = vld [vmem:[%s3641_s1 + $0x48c] ss:$16 sps:$4 sm:$0xff]  }
  0x5c   :  { %1474 = vmatpush1.bf16.msra.mxu1 %v2590_v34  ;;  %1313 = vmatprep.subr.bf16.mxu0 %v2595_v36  ;;  %v2679_v34 = vld [vmem:[%s3641_s1 + $0x4a0] ss:$16 sps:$4 sm:$0xff]   ;;  %v2687_v36 = vld [vmem:[%s3641_s1 + $0x4c4] ss:$16 sps:$4 sm:$0xff]  }
  0x5d   :  { %1475 = vmatprep.subr.bf16.mxu1 %v2598_v37  ;;  %v2690_v37 = vld [vmem:[%s3641_s1 + $0x4ac] ss:$16 sps:$4 sm:$0xff]  }
  0x5f   :  { %1314 = vmatpush1.bf16.msra.mxu0 %v2593_v38  ;;  %v2685_v38 = vld [vmem:[%s3641_s1 + $0x4c0] ss:$16 sps:$4 sm:$0xff]  }
  0x60   :  { %1476 = vmatpush1.bf16.msra.mxu1 %v2596_v39  ;;  %1315 = vmatprep.subr.bf16.mxu0 %v2601_v40  ;;  %v2688_v39 = vld [vmem:[%s3641_s1 + $0x4a8] ss:$16 sps:$4 sm:$0xff]   ;;  %v2693_v40 = vld [vmem:[%s3641_s1 + $0x4e4] ss:$16 sps:$4 sm:$0xff]  }
  0x61   :  { %1477 = vmatprep.subr.bf16.mxu1 %v2604_v41  ;;  %v2696_v41 = vld [vmem:[%s3641_s1 + $0x4cc] ss:$16 sps:$4 sm:$0xff]  }
  0x63   :  { %1316 = vmatpush1.bf16.msra.mxu0 %v2599_v42  ;;  %v2691_v42 = vld [vmem:[%s3641_s1 + $0x4e0] ss:$16 sps:$4 sm:$0xff]  }
  0x64   :  { %1478 = vmatpush1.bf16.msra.mxu1 %v2602_v43  ;;  %1317 = vmatprep.subr.bf16.mxu0 %v2607_v44  ;;  %v2694_v43 = vld [vmem:[%s3641_s1 + $0x4c8] ss:$16 sps:$4 sm:$0xff]   ;;  %v2699_v44 = vld [vmem:[%s3641_s1 + $0x504] ss:$16 sps:$4 sm:$0xff]  }
  0x65   :  { %1479 = vmatprep.subr.bf16.mxu1 %v2610_v45  ;;  %v2702_v45 = vld [vmem:[%s3641_s1 + $0x4ec] ss:$16 sps:$4 sm:$0xff]  }
  0x67   :  { %1318 = vmatpush1.bf16.msra.mxu0 %v2605_v46  ;;  %v2697_v46 = vld [vmem:[%s3641_s1 + $0x500] ss:$16 sps:$4 sm:$0xff]  }
  0x68   :  { %1480 = vmatpush1.bf16.msra.mxu1 %v2608_v47  ;;  %1319 = vmatprep.subr.bf16.mxu0 %v2613_v48  ;;  %v2700_v47 = vld [vmem:[%s3641_s1 + $0x4e8] ss:$16 sps:$4 sm:$0xff]  }
  0x69   :  { %1481 = vmatprep.subr.bf16.mxu1 %v2616_v49 }
  0x6b   :  { %1320 = vmatpush1.bf16.msra.mxu0 %v2611_v50 }
  0x6c   :  { %1482 = vmatpush1.bf16.msra.mxu1 %v2614_v51  ;;  %1321 = vmatprep.subr.bf16.mxu0 %v2619_v52 }
  0x6d   :  { %1483 = vmatprep.subr.bf16.mxu1 %v2622_v53 }
  0x6f   :  { %1322 = vmatpush1.bf16.msra.mxu0 %v2617_v54 }
  0x70   :  { %1484 = vmatpush1.bf16.msra.mxu1 %v2620_v55  ;;  %1323 = vmatprep.subr.bf16.mxu0 %v2625_v56 }
  0x71   :  { %1485 = vmatprep.subr.bf16.mxu1 %v2628_v57 }
  0x73   :  { %1324 = vmatpush1.bf16.msra.mxu0 %v2623_v58 }
  0x74   :  { %1486 = vmatpush1.bf16.msra.mxu1 %v2626_v59  ;;  %1325 = vmatprep.subr.bf16.mxu0 %v2631_v60 }
  0x75   :  { %1487 = vmatprep.subr.bf16.mxu1 %v2634_v61 }
  0x77   :  { %1326 = vmatpush1.bf16.msra.mxu0 %v2629_v62 }
  0x78   :  { %1488 = vmatpush1.bf16.msra.mxu1 %v2632_v63  ;;  %1327 = vmatprep.subr.bf16.mxu0 %v2637_v0 }
  0x79   :  { %1489 = vmatprep.subr.bf16.mxu1 %v2640_v1 }
  0x7b   :  { %1328 = vmatpush1.bf16.msra.mxu0 %v2635_v3 }
  0x7c   :  { %1490 = vmatpush1.bf16.msra.mxu1 %v2638_v4  ;;  %1329 = vmatprep.subr.bf16.mxu0 %v2643_v5 }
  0x7d   :  { %1491 = vmatprep.subr.bf16.mxu1 %v2646_v6 }
  0x7f   :  { %1330 = vmatpush1.bf16.msra.mxu0 %v2641_v7 }
  0x80   :  { %1492 = vmatpush1.bf16.msra.mxu1 %v2644_v8  ;;  %1340 = vmatprep.subr.bf16.mxu0 %v2651_v9 }
  0x81   :  { %1493 = vmatprep.subr.bf16.mxu1 %v2654_v10 }
  0x82   :  { %1332 = vmatmul.mubr.bf16.vlgmr.msra.gmra.mrb[0].mxu0 %v2098_v11 }
  0x83   :  { %1341 = vmatpush1.bf16.msra.mxu0 %v2649_v12  ;;  %1372 = vmatprep.mubr.bf16.mxu0 %v2101_v18 }
  0x84   :  { %1494 = vmatpush1.bf16.msra.mxu1 %v2652_v13  ;;  %1342 = vmatprep.subr.bf16.mxu0 %v2657_v14 }
  0x85   :  { %1504 = vmatprep.subr.bf16.mxu1 %v2660_v15 }
  0x87   :  { %1496 = vmatmul.mubr.bf16.vlgmr.msra.gmra.mrb[4].mxu1 %v2098_v11  ;;  %1343 = vmatpush1.bf16.msra.mxu0 %v2655_v17 }
  0x88   :  { %1505 = vmatpush1.bf16.msra.mxu1 %v2658_v19  ;;  %1344 = vmatprep.subr.bf16.mxu0 %v2663_v20 }
  0x89   :  { %1506 = vmatprep.subr.bf16.mxu1 %v2666_v21  ;;  %1536 = vmatprep.mubr.bf16.mxu1 %v2101_v18 }
  0x8b   :  { %1345 = vmatpush1.bf16.msra.mxu0 %v2661_v22 }
  0x8c   :  { %1507 = vmatpush1.bf16.msra.mxu1 %v2664_v23  ;;  %1346 = vmatprep.subr.bf16.mxu0 %v2669_v24 }
  0x8d   :  { %1508 = vmatprep.subr.bf16.mxu1 %v2672_v25 }
  0x8f   :  { %1347 = vmatpush1.bf16.msra.mxu0 %v2667_v26 }
  0x90   :  { %1509 = vmatpush1.bf16.msra.mxu1 %v2670_v27  ;;  %1348 = vmatprep.subr.bf16.mxu0 %v2675_v28 }
  0x91   :  { %1510 = vmatprep.subr.bf16.mxu1 %v2678_v29 }
  0x93   :  { %1349 = vmatpush1.bf16.msra.mxu0 %v2673_v30 }
  0x94   :  { %1511 = vmatpush1.bf16.msra.mxu1 %v2676_v31  ;;  %1350 = vmatprep.subr.bf16.mxu0 %v2681_v32 }
  0x95   :  { %1512 = vmatprep.subr.bf16.mxu1 %v2684_v33 }
  0x97   :  { %1351 = vmatpush1.bf16.msra.mxu0 %v2679_v34 }
  0x98   :  { %1513 = vmatpush1.bf16.msra.mxu1 %v2682_v35  ;;  %1352 = vmatprep.subr.bf16.mxu0 %v2687_v36 }
  0x99   :  { %1514 = vmatprep.subr.bf16.mxu1 %v2690_v37 }
  0x9b   :  { %1353 = vmatpush1.bf16.msra.mxu0 %v2685_v38 }
  0x9c   :  { %1515 = vmatpush1.bf16.msra.mxu1 %v2688_v39  ;;  %1354 = vmatprep.subr.bf16.mxu0 %v2693_v40 }
  0x9d   :  { %1516 = vmatprep.subr.bf16.mxu1 %v2696_v41 }
  0x9f   :  { %1355 = vmatpush1.bf16.msra.mxu0 %v2691_v42 }
  0xa0   :  { %1517 = vmatpush1.bf16.msra.mxu1 %v2694_v43 }
  0xa1   :  { %12 = vsyncpa [#allocation3], 0  ;;  %1356 = vmatprep.subr.bf16.mxu0 %v2699_v44  ;;  %1518 = vmatprep.subr.bf16.mxu1 %v2702_v45  ;;  %v2705_v48 = vld [vmem:[%s3641_s1 + $0x524] ss:$16 sps:$4 sm:$0xff]   ;;  %v2708_v49 = vld [vmem:[%s3641_s1 + $0x50c] ss:$16 sps:$4 sm:$0xff]   ;;  %v2100_v15 = vcombine.low %v3296_v16, %v3296_v16 }
  0xa2   :  { %v2703_v50 = vld [vmem:[%s3641_s1 + $0x520] ss:$16 sps:$4 sm:$0xff]   ;;  %v2706_v51 = vld [vmem:[%s3641_s1 + $0x508] ss:$16 sps:$4 sm:$0xff]   ;;  %v2711_v52 = vld [vmem:[%s3641_s1 + $0x544] ss:$16 sps:$4 sm:$0xff]  }
  0xa3   :  { %1357 = vmatpush1.bf16.msra.mxu0 %v2697_v46  ;;  %v2714_v53 = vld [vmem:[%s3641_s1 + $0x52c] ss:$16 sps:$4 sm:$0xff]   ;;  %v2709_v54 = vld [vmem:[%s3641_s1 + $0x540] ss:$16 sps:$4 sm:$0xff]   ;;  %v2712_v55 = vld [vmem:[%s3641_s1 + $0x528] ss:$16 sps:$4 sm:$0xff]  }
  0xa4   :  { %1519 = vmatpush1.bf16.msra.mxu1 %v2700_v47  ;;  %1358 = vmatprep.subr.bf16.mxu0 %v2705_v48  ;;  %v2717_v56 = vld [vmem:[%s3641_s1 + $0x564] ss:$16 sps:$4 sm:$0xff]   ;;  %v2720_v57 = vld [vmem:[%s3641_s1 + $0x54c] ss:$16 sps:$4 sm:$0xff]   ;;  %v2715_v58 = vld [vmem:[%s3641_s1 + $0x560] ss:$16 sps:$4 sm:$0xff]  }
  0xa5   :  { %1520 = vmatprep.subr.bf16.mxu1 %v2708_v49  ;;  %v2718_v59 = vld [vmem:[%s3641_s1 + $0x548] ss:$16 sps:$4 sm:$0xff]   ;;  %v2723_v60 = vld [vmem:[%s3641_s1 + $0x584] ss:$16 sps:$4 sm:$0xff]   ;;  %v2726_v61 = vld [vmem:[%s3641_s1 + $0x56c] ss:$16 sps:$4 sm:$0xff]  }
  0xa6   :  { %v2721_v62 = vld [vmem:[%s3641_s1 + $0x580] ss:$16 sps:$4 sm:$0xff]   ;;  %v2724_v63 = vld [vmem:[%s3641_s1 + $0x568] ss:$16 sps:$4 sm:$0xff]   ;;  %v2729_v0 = vld [vmem:[%s3641_s1 + $0x5a4] ss:$16 sps:$4 sm:$0xff]  }
  0xa7   :  { %1359 = vmatpush1.bf16.msra.mxu0 %v2703_v50  ;;  %v2732_v1 = vld [vmem:[%s3641_s1 + $0x58c] ss:$16 sps:$4 sm:$0xff]   ;;  %v2727_v3 = vld [vmem:[%s3641_s1 + $0x5a0] ss:$16 sps:$4 sm:$0xff]   ;;  %v2730_v4 = vld [vmem:[%s3641_s1 + $0x588] ss:$16 sps:$4 sm:$0xff]  }
  0xa8   :  { %1521 = vmatpush1.bf16.msra.mxu1 %v2706_v51  ;;  %1360 = vmatprep.subr.bf16.mxu0 %v2711_v52  ;;  %v2735_v5 = vld [vmem:[%s3641_s1 + $0x5c4] ss:$16 sps:$4 sm:$0xff]   ;;  %v2738_v6 = vld [vmem:[%s3641_s1 + $0x5ac] ss:$16 sps:$4 sm:$0xff]   ;;  %v2733_v7 = vld [vmem:[%s3641_s1 + $0x5c0] ss:$16 sps:$4 sm:$0xff]  }
  0xa9   :  { %1522 = vmatprep.subr.bf16.mxu1 %v2714_v53  ;;  %v2736_v8 = vld [vmem:[%s3641_s1 + $0x5a8] ss:$16 sps:$4 sm:$0xff]   ;;  %v2741_v9 = vld [vmem:[%s3641_s1 + $0x5e4] ss:$16 sps:$4 sm:$0xff]   ;;  %v2744_v10 = vld [vmem:[%s3641_s1 + $0x5cc] ss:$16 sps:$4 sm:$0xff]  }
  0xaa   :  { %v2739_v11 = vld [vmem:[%s3641_s1 + $0x5e0] ss:$16 sps:$4 sm:$0xff]   ;;  %v2742_v12 = vld [vmem:[%s3641_s1 + $0x5c8] ss:$16 sps:$4 sm:$0xff]   ;;  %v2749_v13 = vld [vmem:[%s3641_s1 + $0x5ec] ss:$16 sps:$4 sm:$0xff]  }
  0xab   :  { %1361 = vmatpush1.bf16.msra.mxu0 %v2709_v54  ;;  %v2753_v14 = vld [vmem:[%s3643_s3 + $0x40] sm:$0xff]   ;;  %v2747_v17 = vld [vmem:[%s3641_s1 + $0x5e8] ss:$16 sps:$4 sm:$0xff]   ;;  %v2752_v19 = vld [vmem:[%s3641_s1 + $0x60c] ss:$16 sps:$4 sm:$0xff]   ;;  %v230_v54 = vlaneseq  ;;  %vm2832_vm5 = vmmov 0  }
  0xac   :  { %1523 = vmatpush1.bf16.msra.mxu1 %v2712_v55  ;;  %1362 = vmatprep.subr.bf16.mxu0 %v2717_v56  ;;  %v2754_v18 = vld [vmem:[%s3643_s3] sm:$0xff]   ;;  %v2755_v16 = vld [vmem:[%s3643_s3 + $0x48] sm:$0xff]   ;;  %v2805_v21 = vld [vmem:[%s3640_s0 + $0x18] ss:$0 sps:$4 sm:$0xff]  }
  0xad   :  { %1524 = vmatprep.subr.bf16.mxu1 %v2720_v57  ;;  %v2750_v20 = vld [vmem:[%s3641_s1 + $0x608] ss:$16 sps:$4 sm:$0xff]   ;;  %v2758_v27 = vld [vmem:[%s3643_s3 + $0x10] sm:$0xff]   ;;  %v2761_v30 = vld [vmem:[%s3643_s3 + $0xc0] sm:$0xff]   ;;  %v231_v55 = vshrl.u32 %v230_v54, 7 }
  0xae   :  { %v2756_v26 = vld [vmem:[%s3643_s3 + $0x8] sm:$0xff]   ;;  %v2759_v28 = vld [vmem:[%s3643_s3 + $0x58] sm:$0xff]   ;;  %v2762_v31 = vld [vmem:[%s3643_s3 + $0x80] sm:$0xff]  }
  0xaf   :  { %1363 = vmatpush1.bf16.msra.mxu0 %v2715_v58  ;;  %v2760_v29 = vld [vmem:[%s3643_s3 + $0x18] sm:$0xff]   ;;  %v2763_v32 = vld [vmem:[%s3643_s3 + $0x60] sm:$0xff]   ;;  %v2765_v34 = vld [vmem:[%s3643_s3 + $0xc8] sm:$0xff]   ;;  %v232_v56 = vsub.s32 0, %v231_v55  ;;  %v236_v58 = vsub.s32 1, %v231_v55 }
  0xb0   :  { %1525 = vmatpush1.bf16.msra.mxu1 %v2718_v59  ;;  %1364 = vmatprep.subr.bf16.mxu0 %v2723_v60  ;;  %v2764_v33 = vld [vmem:[%s3643_s3 + $0x20] sm:$0xff]   ;;  %v2766_v35 = vld [vmem:[%s3643_s3 + $0x88] sm:$0xff]   ;;  %v2769_v38 = vld [vmem:[%s3643_s3 + $0xd0] sm:$0xff]  }
  0xb1   :  { %1526 = vmatprep.subr.bf16.mxu1 %v2726_v61  ;;  %v2767_v36 = vld [vmem:[%s3643_s3 + $0x68] sm:$0xff]   ;;  %v2770_v39 = vld [vmem:[%s3643_s3 + $0x90] sm:$0xff]   ;;  %v2773_v42 = vld [vmem:[%s3643_s3 + $0xd8] sm:$0xff]  }
  0xb2   :  { %v2768_v37 = vld [vmem:[%s3643_s3 + $0x28] sm:$0xff]   ;;  %v2771_v40 = vld [vmem:[%s3643_s3 + $0x70] sm:$0xff]   ;;  %v2774_v43 = vld [vmem:[%s3643_s3 + $0x98] sm:$0xff]  }
  0xb3   :  { %1365 = vmatpush1.bf16.msra.mxu0 %v2721_v62  ;;  %v2772_v41 = vld [vmem:[%s3643_s3 + $0x30] sm:$0xff]   ;;  %v2775_v44 = vld [vmem:[%s3643_s3 + $0x78] sm:$0xff]   ;;  %v2777_v46 = vld [vmem:[%s3643_s3 + $0xe0] sm:$0xff]  }
  0xb4   :  { %1527 = vmatpush1.bf16.msra.mxu1 %v2724_v63  ;;  %1366 = vmatprep.subr.bf16.mxu0 %v2729_v0  ;;  %v2776_v45 = vld [vmem:[%s3643_s3 + $0x38] sm:$0xff]   ;;  %v2778_v47 = vld [vmem:[%s3643_s3 + $0xa0] sm:$0xff]   ;;  %v2779_v48 = vld [vmem:[%s3643_s3 + $0xe8] sm:$0xff]  }
  0xb5   :  { %1528 = vmatprep.subr.bf16.mxu1 %v2732_v1  ;;  %v2780_v49 = vld [vmem:[%s3643_s3 + $0xa8] sm:$0xff]   ;;  %v2781_v50 = vld [vmem:[%s3643_s3 + $0xf0] sm:$0xff]   ;;  %v2783_v52 = vld [vmem:[%s3643_s3 + $0xf8] sm:$0xff]  }
  0xb6   :  { %v2782_v51 = vld [vmem:[%s3643_s3 + $0xb0] sm:$0xff]   ;;  %v2784_v53 = vld [vmem:[%s3643_s3 + $0xb8] sm:$0xff]   ;;  %v228_v57 = vld [vmem:[%s3642_s2] sm:$0xf] }
  0xb7   :  { %1367 = vmatpush1.bf16.msra.mxu0 %v2727_v3  ;;  %v233_v59 = vrot.slane %v228_v57, %v232_v56  ;;  %v237_v60 = vrot.slane %v228_v57, %v236_v58 }
  0xb8   :  { %1529 = vmatpush1.bf16.msra.mxu1 %v2730_v4  ;;  %1368 = vmatprep.subr.bf16.mxu0 %v2735_v5 }
  0xb9   :  { %1530 = vmatprep.subr.bf16.mxu1 %v2738_v6 }
  0xbb   :  { %1369 = vmatpush1.bf16.msra.mxu0 %v2733_v7 }
  0xbc   :  { %1531 = vmatpush1.bf16.msra.mxu1 %v2736_v8  ;;  %1370 = vmatprep.subr.bf16.mxu0 %v2741_v9 }
  0xbd   :  { %1532 = vmatprep.subr.bf16.mxu1 %v2744_v10  ;;  %v240_v10 = vsub.s32 2, %v231_v55 }
  0xbf   :  { %1371 = vmatpush1.bf16.msra.mxu0 %v2739_v11  ;;  %v244_v11 = vsub.s32 3, %v231_v55 }
  0xc0   :  { %1533 = vmatpush1.bf16.msra.mxu1 %v2742_v12  ;;  %2349 = vmatprep.subr.bf16.mxu0 %v2753_v14  ;;  %v241_v12 = vrot.slane %v228_v57, %v240_v10 }
  0xc1   :  { %1534 = vmatprep.subr.bf16.mxu1 %v2749_v13  ;;  %v245_v13 = vrot.slane %v228_v57, %v244_v11 }
  0xc2   :  { %1373 = vmatmul.mubr.bf16.vlgmr.msra.gmra.mrb[0].mxu0 %v2100_v15 }
  0xc3   :  { %2350 = vmatpush3.bf16.msra.mxu0 %v2754_v18 }
  0xc4   :  { %1535 = vmatpush1.bf16.msra.mxu1 %v2747_v17  ;;  %2351 = vmatprep.subr.bf16.mxu0 %v2755_v16 }
  0xc5   :  { %1545 = vmatprep.subr.bf16.mxu1 %v2752_v19 }
  0xc7   :  { %1537 = vmatmul.mubr.bf16.vlgmr.msra.gmra.mrb[4].mxu1 %v2100_v15  ;;  %2352 = vmatpush3.bf16.msra.mxu0 %v2756_v26 }
  0xc8   :  { %1546 = vmatpush1.bf16.msra.mxu1 %v2750_v20  ;;  %1577 = vmatprep.mubr.bf16.mxu1 %v2830_v2  ;;  %v2757_v2 = vld [vmem:[%s3643_s3 + $0x50] sm:$0xff]  }
  0xc9   :  { %2353 = vmatprep.subr.bf16.mxu0 %v2757_v2  ;;  %2371 = vmatprep.subr.bf16.mxu1 %v2761_v30 }
  0xcb   :  { %2354 = vmatpush3.bf16.msra.mxu0 %v2758_v27 }
  0xcc   :  { %2355 = vmatprep.subr.bf16.mxu0 %v2759_v28 }
  0xcf   :  { %2356 = vmatpush3.bf16.msra.mxu0 %v2760_v29 }
  0xd0   :  { %2357 = vmatprep.subr.bf16.mxu0 %v2763_v32 }
  0xd3   :  { %2300 = vmatmul.mubr.msk.bf16.vlgmr.msra.gmra.mrb[4].mxu1 %vm1254_vm0, %v2805_v21  ;;  %2358 = vmatpush3.bf16.msra.mxu0 %v2764_v33 }
  0xd4   :  { %2372 = vmatpush3.bf16.msra.mxu1 %v2762_v31  ;;  %2359 = vmatprep.subr.bf16.mxu0 %v2767_v36 }
  0xd5   :  { %2373 = vmatprep.subr.bf16.mxu1 %v2765_v34 }
  0xd7   :  { %2360 = vmatpush3.bf16.msra.mxu0 %v2768_v37 }
  0xd8   :  { %2374 = vmatpush3.bf16.msra.mxu1 %v2766_v35  ;;  %2361 = vmatprep.subr.bf16.mxu0 %v2771_v40  ;;  %v2831_v40 = vmov 0.0  }
  0xd9   :  { %2375 = vmatprep.subr.bf16.mxu1 %v2769_v38 }
  0xda   :  { %v3502_v22 = vpop.f32.mrb[0].mxu1 }
  0xdb   :  { %v3504_v23 = vpop.f32.mrb[1].mxu1  ;;  %2362 = vmatpush3.bf16.msra.mxu0 %v2772_v41  ;;  %v2786_v41 = vld [vmem:[%s3645_s5 + $0x8] sm:$0xff]  }
  0xdc   :  { %v1419_v24 = vpop.f32.mrb[2].mxu1  ;;  %2376 = vmatpush3.bf16.msra.mxu1 %v2770_v39  ;;  %2363 = vmatprep.subr.bf16.mxu0 %v2775_v44  ;;  %v2785_v39 = vld [vmem:[%s3645_s5] sm:$0xff]  }
  0xdd   :  { %v1420_v25 = vpop.f32.mrb[3].mxu1  ;;  %2377 = vmatprep.subr.bf16.mxu1 %v2773_v42  ;;  %v2787_v42 = vld [vmem:[%s3645_s5 + $0x10] sm:$0xff]   ;;  %v2789_v44 = vld [vmem:[%s3645_s5 + $0x20] sm:$0xff]  }
  0xdf   :  { %2364 = vmatpush3.bf16.msra.mxu0 %v2776_v45  ;;  %v2790_v45 = vld [vmem:[%s3645_s5 + $0x28] sm:$0xff]  }
  0xe0   :  { %2378 = vmatpush3.bf16.msra.mxu1 %v2774_v43  ;;  %2402 = vmatprep.subr.bf16.mxu0 %v2831_v40  ;;  %v2788_v43 = vld [vmem:[%s3645_s5 + $0x18] sm:$0xff]  }
  0xe1   :  { %2379 = vmatprep.subr.bf16.mxu1 %v2777_v46  ;;  %v2791_v46 = vld [vmem:[%s3645_s5 + $0x30] sm:$0xff]  }
  0xe4   :  { %2380 = vmatpush3.bf16.msra.mxu1 %v2778_v47  ;;  %v2792_v47 = vld [vmem:[%s3645_s5 + $0x38] sm:$0xff]  }
  0xe5   :  { %2381 = vmatprep.subr.bf16.mxu1 %v2779_v48 }
  0xe8   :  { %2382 = vmatpush3.bf16.msra.mxu1 %v2780_v49 }
  0xe9   :  { %2383 = vmatprep.subr.bf16.mxu1 %v2781_v50 }
  0xec   :  { %2384 = vmatpush3.bf16.msra.mxu1 %v2782_v51 }
  0xed   :  { %2385 = vmatprep.subr.bf16.mxu1 %v2783_v52 }
  0xf0   :  { %2386 = vmatpush3.bf16.msra.mxu1 %v2784_v53  ;;  %v2305_v53 = vld [vmem:[%s3644_s4] ss:$0 sm:$0xff]  ;;  %s2833_s4 = smov [#allocation2]  }
  0xf1   :  { %s2088_s19 = sshll.u32 %s2833_s4, 4  ;;  %s2089_s19 = int_to_ptr.vmem [resolvable:$true] %s2088_s19 }
  0xf2   :  { %s2806_s20 = scalar_lea.vmem %s2089_s19, 128  ;;  %p2811_p1 = scmp.lt.s32.totalorder %s2089_s19, %s2089_s19 }
  0xf3   :  { %p2807_p0 = scmp.ne.s32.totalorder %s2089_s19, %s2806_s20  ;;  %p2812_p2 = scmp.lt.s32.totalorder %s2806_s20, %s2806_s20 }
  0xf5   :  { %p2813_p3 = por %p2812_p2, %p2811_p1 }
  0xf7   :  { %p2814_p4 = pnand %p2813_p3, %p2807_p0 }
 0x195   :  { %v1374_v61 = vpop.f32.mrb[0].mxu0 }
 0x196   :  { %v2422_v62 = vadd.f32 %v1374_v61, %v233_v59  ;;  %v1376_v63 = vpop.f32.mrb[1].mxu0 }
 0x197   :  { %v2424_v0 = vadd.f32 %v1376_v63, %v237_v60  ;;  %v1378_v1 = vpop.f32.mrb[2].mxu0 }
 0x198   :  { %v2423_v3 = vadd.f32 %v2422_v62, %v3502_v22  ;;  %v1379_v4 = vpop.f32.mrb[3].mxu0 }
 0x199   :  { %v2425_v5 = vadd.f32 %v2424_v0, %v3504_v23  ;;  %v2339_v4 = vld [vmem:[%s3646_s6] ss:$0 sm:$0xff] }
 0x19a   :  { %v1590_v6 = vmin.f32 %v2423_v3, 0.0  ;;  %vm1586_vm1 = vcmp.gt.f32.partialorder %v2423_v3, 0.0 }
 0x19b   :  { %v1591_v7 = vmin.f32 %v2425_v5, 0.0  ;;  %vm1587_vm2 = vcmp.gt.f32.partialorder %v2425_v5, 0.0 }
 0x19c   :  { %v1594_v8 = vmul.f32 1.442695, %v1590_v6 }
 0x19d   :  { %v1596_v9 = vmul.f32 1.442695, %v1591_v7 }
 0x19e   :  { %2793 = vpow2.f32 %v1594_v8 }
 0x19f   :  { %2795 = vpow2.f32 %v1596_v9 }
 0x1a6   :  { %v1579_v14 = vpop.f32.mrb[4].mxu1 }
 0x1a7   :  { %v2426_v15 = vadd.f32 %v1579_v14, %v241_v12  ;;  %v1581_v17 = vpop.f32.mrb[5].mxu1 }
 0x1a8   :  { %v2427_v18 = vadd.f32 %v1581_v17, %v245_v13  ;;  %v1583_v19 = vpop.f32.mrb[6].mxu1  ;;  %v2794_v16 = vpop.eup %2793 }
 0x1a9   :  { %v1592_v20 = vmin.f32 %v2426_v15, 0.0  ;;  %v1584_v21 = vpop.f32.mrb[7].mxu1  ;;  %v2796_v22 = vpop.eup %2795  ;;  %v2301_v23 = vadd.f32 -1.0, %v2794_v16  ;;  %vm1588_vm3 = vcmp.gt.f32.partialorder %v2426_v15, 0.0 }
 0x1aa   :  { %v1593_v24 = vmin.f32 %v2427_v18, 0.0  ;;  %v2302_v26 = vadd.f32 -1.0, %v2796_v22  ;;  %vm1589_vm4 = vcmp.gt.f32.partialorder %v2427_v18, 0.0 }
 0x1ab   :  { %v1598_v25 = vmul.f32 1.442695, %v1592_v20  ;;  %v1606_v2 = vsel %vm1586_vm1, %v2423_v3, %v2301_v23 }
 0x1ac   :  { %v1600_v27 = vmul.f32 1.442695, %v1593_v24  ;;  %v1607_v28 = vsel %vm1587_vm2, %v2425_v5, %v2302_v26  ;;  %v1610_v30 = vpack.c.bf16 %v1606_v2, %v1606_v2 }
 0x1ad   :  { %2797 = vpow2.f32 %v1598_v25  ;;  %v1611_v29 = vpack.c.bf16 %v1607_v28, %v1607_v28 }
 0x1ae   :  { %2799 = vpow2.f32 %v1600_v27 }
 0x1af   :  { %1909 = vmatprep.mubr.bf16.mxu0 %v1611_v29 }
 0x1b0   :  { %1910 = vmatmul.mubr.bf16.vlgmr.msra.gmra.mrb[4].mxu0 %v1610_v30 }
 0x1b1   :  { %2403 = vmatpush3.bf16.msra.mxu0 %v2785_v39  ;;  %2418 = vmatprep.mubr.msk.bf16.mxu0 %vm2832_vm5, %v2831_v40 }
 0x1b2   :  { %2404 = vmatprep.subr.bf16.mxu0 %v2831_v40 }
 0x1b5   :  { %2405 = vmatpush3.bf16.msra.mxu0 %v2786_v41 }
 0x1b6   :  { %2406 = vmatprep.subr.bf16.mxu0 %v2831_v40 }
 0x1b7   :  { %v2798_v31 = vpop.eup %2797 }
 0x1b8   :  { %v2800_v32 = vpop.eup %2799  ;;  %v2303_v33 = vadd.f32 -1.0, %v2798_v31 }
 0x1b9   :  { %v2304_v34 = vadd.f32 -1.0, %v2800_v32  ;;  %2407 = vmatpush3.bf16.msra.mxu0 %v2787_v42 }
 0x1ba   :  { %v1608_v35 = vsel %vm1588_vm3, %v2426_v15, %v2303_v33  ;;  %2408 = vmatprep.subr.bf16.mxu0 %v2831_v40 }
 0x1bb   :  { %v1609_v36 = vsel %vm1589_vm4, %v2427_v18, %v2304_v34  ;;  %v1612_v38 = vpack.c.bf16 %v1608_v35, %v1608_v35 }
 0x1bc   :  { %v1613_v37 = vpack.c.bf16 %v1609_v36, %v1609_v36 }
 0x1bd   :  { %2409 = vmatpush3.bf16.msra.mxu0 %v2788_v43 }
 0x1be   :  { %1949 = vmatprep.mubr.bf16.mxu1 %v1613_v37  ;;  %2410 = vmatprep.subr.bf16.mxu0 %v2831_v40 }
 0x1bf   :  { %1950 = vmatmul.mubr.bf16.vlgmr.msra.gmra.mrb[8].mxu1 %v1612_v38 }
 0x1c1   :  { %2411 = vmatpush3.bf16.msra.mxu0 %v2789_v44 }
 0x1c2   :  { %2412 = vmatprep.subr.bf16.mxu0 %v2831_v40 }
 0x1c5   :  { %2413 = vmatpush3.bf16.msra.mxu0 %v2790_v45 }
 0x1c6   :  { %2414 = vmatprep.subr.bf16.mxu0 %v2831_v40 }
 0x1c9   :  { %2415 = vmatpush3.bf16.msra.mxu0 %v2791_v46 }
 0x1ca   :  { %2416 = vmatprep.subr.bf16.mxu0 %v2831_v40 }
 0x1cd   :  { %2417 = vmatpush3.bf16.msra.mxu0 %v2792_v47 }
 0x283   :  { %v2365_v48 = vpop.f32.mrb[4].mxu0 }
 0x284   :  { %v2366_v49 = vpop.f32.mrb[5].mxu0 }
 0x285   :  { %v2367_v50 = vadd.f32 %v2366_v49, %v2365_v48  ;;  %v2368_v51 = vpop.f32.mrb[6].mxu0 }
 0x286   :  { %v2369_v52 = vpop.f32.mrb[7].mxu0 }
 0x287   :  { %v1912_v56 = vadd.f32 %v2367_v50, %v2305_v53 }
 0x292   :  { %v2387_v54 = vpop.f32.mrb[8].mxu1 }
 0x293   :  { %v2388_v55 = vpop.f32.mrb[9].mxu1 }
 0x294   :  { %v2389_v57 = vadd.f32 %v2388_v55, %v2387_v54  ;;  %v2390_v58 = vpop.f32.mrb[10].mxu1 }
 0x295   :  { %v2391_v59 = vpop.f32.mrb[11].mxu1 }
 0x296   :  { %v1952_v60 = vadd.f32 %v2389_v57, %v1912_v56 }
 0x298   :  { %v1958_v61 = vmin.f32 %v1952_v60, 0.0  ;;  %vm1957_vm6 = vcmp.gt.f32.partialorder %v1952_v60, 0.0 }
 0x29a   :  { %v1959_v62 = vmul.f32 1.442695, %v1958_v61 }
 0x29c   :  { %2801 = vpow2.f32 %v1959_v62 }
 0x2a6   :  { %v2802_v63 = vpop.eup %2801 }
 0x2a7   :  { %v2338_v0 = vadd.f32 -1.0, %v2802_v63 }
 0x2a9   :  { %v1962_v1 = vsel %vm1957_vm6, %v1952_v60, %v2338_v0 }
 0x2aa   :  { %v1963_v3 = vpack.c.bf16 %v1962_v1, %v1962_v1 }
 0x2ac   :  { %2419 = vmatmul.mubr.bf16.vlgmr.msra.gmra.mrb[8].mxu0 %v1963_v3 }
 0x37f   :  { %v2069_v5 = vpop.f32.mrb[8].mxu0 }
 0x380   :  { %v2070_v6 = vadd.f32 %v2339_v4, %v2069_v5  ;;  %v2420_v7 = vpop.f32.mrb[9].mxu0 }
 0x381   :  { %v2072_v8 = vpop.f32.mrb[10].mxu0 }
 0x382   :  { %v2076_v9 = vmin.f32 %v2070_v6, 0.0  ;;  %v2421_v10 = vpop.f32.mrb[11].mxu0  ;;  %vm2075_vm7 = vcmp.gt.f32.partialorder %v2070_v6, 0.0 }
 0x384   :  { %v2077_v11 = vmul.f32 1.442695, %v2076_v9 }
 0x386   :  { %2803 = vpow2.f32 %v2077_v11 }
 0x390   :  { %v2804_v12 = vpop.eup %2803 }
 0x391   :  { %v2348_v13 = vadd.f32 -1.0, %v2804_v12 }
 0x393   :  { %v2080_v14 = vsel %vm2075_vm7, %v2070_v6, %v2348_v13 }
 0x394   :  { %2081 = vst [vmem:[#allocation2] sm:$0xff] %v2080_v14 }
 0x395   :  { %2817 = shalt.err (!%p2814_p4)
}
 0x396   :  { %s2818_s22 = scalar_lea.hbm %s3647_s7, 128 }
 0x397   :  { %p2819_p5 = scmp.ne.s32.totalorder %s3647_s7, %s2818_s22  ;;  %p2822_p6 = scmp.lt.u32.totalorder %s2818_s22, %s3647_s7 }
 0x399   :  { %p2824_p7 = pnand %p2822_p6, %p2819_p5 }
 0x39b   :  { %2827 = shalt.err (!%p2824_p7)
}
 0x39c   :  { %2091 = dma.vmem_to_hbm [thread:$0]  %s2089_s19, 128, %s3647_s7, [#allocation3]  }
 0x39d   :  { %2828 = dma.done.wait [#allocation3], 128  }
 0x39e   :  { %2829 = vsyncadd [#allocation3], 4294967168 }
 0x39f   :  { %2095 = vsyncpa [#allocation3], 1 }

</bundles_post_ra>
